<compile_context>
chip_gen: v7x
topology: tpu7x:2x2x1
jax: 0.10.0
libtpu: 0.0.40
codegen_flags: <defaults>
</compile_context>

<pallas_src>
import jax
import jax.numpy as jnp
from jax.experimental import pallas as pl
from jax.experimental.pallas import tpu as pltpu


# -----------------------------------------------------------------------------
# Single fused Pallas kernel: cardinality + L1 / GIoU for ALL layers at once.
# -----------------------------------------------------------------------------
def _criterion_kernel(logits_ref, tgt_len_ref, boxes_ref, inv_nb_ref, out_ref):
    L, B, Q, C1 = logits_ref.shape
    inv_nb = inv_nb_ref[0]                                   # runtime SMEM scalar
    row = jax.lax.broadcasted_iota(jnp.int32, (8, 128), 0)   # output row selector

    for l in range(L):                                       # L is small & static
        # ---------------- cardinality error ----------------
        # Stream one (Q, C1) slice per batch: tiny live vreg footprint; the
        # foreground max / no-object compare is a lane-axis reduce (XLU).
        card_acc = 0.0
        for b in range(B):
            xb = logits_ref[l, b].astype(jnp.float32)                 # (Q, C1)
            fg = jnp.max(xb[:, : C1 - 1], axis=-1, keepdims=True)     # (Q, 1)
            no_obj = xb[:, C1 - 1:C1]                                 # (Q, 1)
            # argmax(-1) != no-object  <=>  max foreground logit >= no-object
            # (ties resolved toward the lower index, matching torch.argmax)
            card_pred = jnp.sum((fg >= no_obj).astype(jnp.float32))   # scalar
            card_acc = card_acc + jnp.abs(card_pred - tgt_len_ref[b])
        card_err = card_acc * (1.0 / B)

        # ---------------- box losses (L1 + GIoU) ----------------
        # boxes_ref[l]: (8, NPAD)  rows 0-3 = src cxcywh, rows 4-7 = tgt cxcywh.
        bx = boxes_ref[l].astype(jnp.float32)
        l1_sum = jnp.sum(jnp.abs(bx[0:4] - bx[4:8]))

        s_lo = bx[0:2] - 0.5 * bx[2:4]          # [sx0; sy0]  (2, NPAD)
        s_hi = bx[0:2] + 0.5 * bx[2:4]          # [sx1; sy1]
        t_lo = bx[4:6] - 0.5 * bx[6:8]
        t_hi = bx[4:6] + 0.5 * bx[6:8]

        s_wh = s_hi - s_lo
        t_wh = t_hi - t_lo
        area_s = s_wh[0:1] * s_wh[1:2]
        area_t = t_wh[0:1] * t_wh[1:2]

        i_wh = jnp.maximum(jnp.minimum(s_hi, t_hi) - jnp.maximum(s_lo, t_lo), 0.0)
        inter = i_wh[0:1] * i_wh[1:2]
        union = area_s + area_t - inter
        # Exact division (not approx reciprocal): keeps training-loss accuracy
        # and makes padded dummy-box slots contribute exactly 0 to (1 - giou).
        iou = inter / union

        c_wh = jnp.maximum(s_hi, t_hi) - jnp.minimum(s_lo, t_lo)
        area_c = c_wh[0:1] * c_wh[1:2]
        giou = iou - (area_c - union) / area_c
        giou_sum = jnp.sum(1.0 - giou)

        # One lane-dense (8, 128) store per layer: rows 0/1/2 hold the scalars.
        out_ref[l] = jnp.where(
            row == 0, card_err,
            jnp.where(row == 1, l1_sum * inv_nb,
                      jnp.where(row == 2, giou_sum * inv_nb, 0.0)))


# -----------------------------------------------------------------------------
# Wrapper: build the fused box slab and launch ONE pallas_call (no grid).
# -----------------------------------------------------------------------------
def _build_box_slab(src_boxes, tgt_boxes, npad):
    """(L,N,4) x2 cxcywh -> (L, 8, NPAD); pads with identical dummy unit boxes
    in src and tgt so padded slots contribute exactly zero loss."""
    L, N, _ = src_boxes.shape
    s = jnp.transpose(src_boxes, (0, 2, 1)).astype(jnp.float32)   # (L, 4, N)
    t = jnp.transpose(tgt_boxes, (0, 2, 1)).astype(jnp.float32)   # (L, 4, N)
    slab = jnp.concatenate([s, t], axis=1)                        # (L, 8, N)
    if npad > N:
        dummy = jnp.broadcast_to(
            jnp.array([0.5, 0.5, 1.0, 1.0] * 2, jnp.float32).reshape(1, 8, 1),
            (L, 8, npad - N))
        slab = jnp.concatenate([slab, dummy], axis=2)
    return slab


def fused_criterion_losses(layer_outputs, layer_indices, targets, num_boxes):
    """Returns (card, l1, giou), each shape (L,): layer 0 = main, 1.. = aux."""
    L = len(layer_outputs)
    B, Q, C1 = layer_outputs[0]["pred_logits"].shape

    # Native layout — NO wrapper-side transpose of the logits slab.
    logits = jnp.stack([lo["pred_logits"] for lo in layer_outputs], axis=0)  # (L,B,Q,C1)

    tgt_lengths = jnp.asarray(
        [t["labels"].shape[0] for t in targets], dtype=jnp.float32)          # (B,)

    # --- matched box slabs: a single batched gather for all layers ---
    tgt_counts = [int(t["boxes"].shape[0]) for t in targets]
    offsets = [0]
    for c in tgt_counts[:-1]:
        offsets.append(offsets[-1] + c)
    all_tgt_boxes = jnp.concatenate([t["boxes"] for t in targets], axis=0)   # (sumT, 4)

    src_idx_layers, tgt_idx_layers = [], []
    for inds in layer_indices:
        src_idx_layers.append(jnp.concatenate(
            [b * Q + src.astype(jnp.int32) for b, (src, _) in enumerate(inds)]))
        tgt_idx_layers.append(jnp.concatenate(
            [offsets[b] + tgt.astype(jnp.int32) for b, (_, tgt) in enumerate(inds)]))
    src_idx = jnp.stack(src_idx_layers)            # (L, N)
    tgt_idx = jnp.stack(tgt_idx_layers)            # (L, N)
    N = src_idx.shape[1]

    pred_flat = jnp.stack(
        [lo["pred_boxes"].reshape(B * Q, 4) for lo in layer_outputs])        # (L, B*Q, 4)
    src_boxes = jnp.take_along_axis(pred_flat, src_idx[:, :, None], axis=1)  # (L, N, 4)
    tgt_boxes = jnp.take(all_tgt_boxes, tgt_idx, axis=0)                     # (L, N, 4)

    NPAD = max(128, ((N + 127) // 128) * 128)      # fixed lane bucket, no recompile
    boxes_slab = _build_box_slab(src_boxes, tgt_boxes, NPAD)                 # (L, 8, NPAD)

    # 1/num_boxes precomputed host-side (num_boxes is a Python int here);
    # still a runtime operand → no recompile when GT count changes.
    inv_nb = jnp.asarray([1.0 / max(float(num_boxes), 1.0)], dtype=jnp.float32)

    out = pl.pallas_call(
        _criterion_kernel,
        out_shape=jax.ShapeDtypeStruct((L, 8, 128), jnp.float32),
        in_specs=[
            pl.BlockSpec(memory_space=pltpu.MemorySpace.VMEM),   # logits (L,B,Q,C1)
            pl.BlockSpec(memory_space=pltpu.MemorySpace.SMEM),   # tgt lengths (B,)
            pl.BlockSpec(memory_space=pltpu.MemorySpace.VMEM),   # boxes slab (L,8,NPAD)
            pl.BlockSpec(memory_space=pltpu.MemorySpace.SMEM),   # 1/num_boxes (1,)
        ],
        out_specs=pl.BlockSpec(memory_space=pltpu.MemorySpace.VMEM),
    )(logits, tgt_lengths, boxes_slab, inv_nb)

    return out[:, 0, 0], out[:, 1, 0], out[:, 2, 0]


# -----------------------------------------------------------------------------
# Matcher + SetCriterion (JAX port)
# -----------------------------------------------------------------------------
class IdentityMatcher:
    # TODO(synk): Hungarian assignment (scipy linear_sum_assignment) has no clean
    # Pallas/TPU equivalent; deterministic identity matching (query j <-> target j).
    def __call__(self, outputs, targets, exclude_class=False):
        inds = []
        for t in targets:
            n = t["labels"].shape[0]
            inds.append((jnp.arange(n, dtype=jnp.int32), jnp.arange(n, dtype=jnp.int32)))
        return inds


class SetCriterion:
    def __init__(self, num_classes, matcher, weight_dict, eos_coef, losses):
        self.num_classes = num_classes
        self.matcher = matcher
        self.weight_dict = weight_dict
        self.eos_coef = eos_coef
        self.losses = losses
        # 'empty_weight' buffer kept for parity with the torch module
        # (only consumed by loss_labels, which is unreachable via get_loss here).
        self.empty_weight = jnp.ones((num_classes + 1,), jnp.float32).at[-1].set(eos_coef)

    def forward(self, outputs, targets, box_type, exclude_class=False):
        for loss in self.losses:
            assert loss in ("cardinality", "boxes"), \
                f"do you really want to compute {loss} loss?"

        outputs_without_aux = {k: v for k, v in outputs.items() if k != "aux_outputs"}
        indices_last = self.matcher(outputs_without_aux, targets,
                                    exclude_class=exclude_class)

        aux_list = list(outputs.get("aux_outputs", []))
        layer_outputs = [outputs_without_aux] + aux_list
        layer_indices = [indices_last] + [
            self.matcher(aux, targets, exclude_class=exclude_class) for aux in aux_list]

        num_boxes = sum(int(t["labels"].shape[0]) for t in targets)

        # Single fused Pallas launch for all (main + aux) layers and all losses.
        card, l1, giou = fused_criterion_losses(
            layer_outputs, layer_indices, targets, num_boxes)

        losses = {}

        def emit(layer_idx, suffix):
            for loss in self.losses:
                if loss == "cardinality":
                    losses[f"cardinality_error_{box_type}{suffix}"] = card[layer_idx]
                elif loss == "boxes":
                    losses[f"loss_bbox_{box_type}{suffix}"] = l1[layer_idx]
                    losses[f"loss_giou_{box_type}{suffix}"] = giou[layer_idx]

        emit(0, "")
        for i in range(len(aux_list)):
            emit(i + 1, f"_{i}")
        return losses, indices_last


# -----------------------------------------------------------------------------
# Demo
# -----------------------------------------------------------------------------
if __name__ == "__main__":
    B, Q, NUM_CLASSES, T = 2, 8, 4, 3          # batch, queries, classes, GT boxes/img
    C1 = NUM_CLASSES + 1

    key = jax.random.PRNGKey(0)
    k1, k2, k3, k4, k5, k6 = jax.random.split(key, 6)

    def rand_boxes(k, n):
        kc, ks = jax.random.split(k)
        centers = jax.random.uniform(kc, (n, 2), minval=0.3, maxval=0.7)
        sizes = jax.random.uniform(ks, (n, 2), minval=0.1, maxval=0.3)
        return jnp.concatenate([centers, sizes], axis=-1).astype(jnp.float32)

    outputs = {
        "pred_logits": jax.random.normal(k1, (B, Q, C1), jnp.float32),
        "pred_boxes": rand_boxes(k2, B * Q).reshape(B, Q, 4),
        "aux_outputs": [
            {
                "pred_logits": jax.random.normal(k3, (B, Q, C1), jnp.float32),
                "pred_boxes": rand_boxes(k4, B * Q).reshape(B, Q, 4),
            }
        ],
    }

    targets = []
    tk = jax.random.split(k5, B)
    lk = jax.random.split(k6, B)
    for b in range(B):
        targets.append(
            {
                "labels": jax.random.randint(lk[b], (T,), 0, NUM_CLASSES).astype(jnp.int32),
                "boxes": rand_boxes(tk[b], T),
            }
        )

    criterion = SetCriterion(
        num_classes=NUM_CLASSES,
        matcher=IdentityMatcher(),
        weight_dict={"loss_bbox": 5.0, "loss_giou": 2.0},
        eos_coef=0.1,
        losses=["cardinality", "boxes"],
    )

    losses, indices_last = criterion.forward(outputs, targets, box_type="xyxy")

    for v in losses.values():
        jax.block_until_ready(v)

    print("KERNEL_OK")
</pallas_src>

<mosaic_0001>
module attributes {stable_mosaic.version = 11 : i64} {
  func.func @_criterion_kernel(%arg0: memref<2x2x8x5xf32, #tpu.memory_space<vmem>>, %arg1: memref<2xf32, #tpu.memory_space<smem>>, %arg2: memref<2x8x128xf32, #tpu.memory_space<vmem>>, %arg3: memref<1xf32, #tpu.memory_space<smem>>, %arg4: memref<2x8x128xf32, #tpu.memory_space<vmem>>) attributes {dimension_semantics = [], scalar_prefetch = 0 : i64, scratch_operands = 0 : i64, tpu.core_type = #tpu.core_type<tc>} {
    %c0 = arith.constant 0 : index
    %0 = memref.load %arg3[%c0] : memref<1xf32, #tpu.memory_space<smem>>
    %1 = tpu.iota {dimensions = array<i32: 0>} : vector<8x128xi32>
    %c0_0 = arith.constant 0 : index
    %c0_1 = arith.constant 0 : index
    %c0_2 = arith.constant 0 : index
    %c0_3 = arith.constant 0 : index
    %2 = vector.load %arg0[%c0_0, %c0_1, %c0_2, %c0_3] : memref<2x2x8x5xf32, #tpu.memory_space<vmem>>, vector<1x1x8x5xf32>
    %3 = vector.shape_cast %2 : vector<1x1x8x5xf32> to vector<8x5xf32>
    %4 = vector.extract_strided_slice %3 {offsets = [0, 0], sizes = [8, 4], strides = [1, 1]} : vector<8x5xf32> to vector<8x4xf32>
    %cst = arith.constant dense<0xFF800000> : vector<8xf32>
    %5 = vector.multi_reduction <maximumf>, %4, %cst [1] : vector<8x4xf32> to vector<8xf32>
    %6 = vector.shape_cast %5 : vector<8xf32> to vector<8x1xf32>
    %7 = vector.extract_strided_slice %3 {offsets = [0, 4], sizes = [8, 1], strides = [1, 1]} : vector<8x5xf32> to vector<8x1xf32>
    %8 = arith.cmpf oge, %6, %7 : vector<8x1xf32>
    %9 = arith.extui %8 : vector<8x1xi1> to vector<8x1xi32>
    %10 = arith.sitofp %9 : vector<8x1xi32> to vector<8x1xf32>
    %11 = vector.shape_cast %10 : vector<8x1xf32> to vector<1x8x1xf32>
    %cst_4 = arith.constant dense<0.000000e+00> : vector<1xf32>
    %12 = vector.multi_reduction <add>, %11, %cst_4 [1, 2] : vector<1x8x1xf32> to vector<1xf32>
    %13 = vector.shape_cast %12 : vector<1xf32> to vector<1x1x1xf32>
    %14 = vector.extract %13[0, 0, 0] : f32 from vector<1x1x1xf32>
    %c0_5 = arith.constant 0 : index
    %15 = memref.load %arg1[%c0_5] : memref<2xf32, #tpu.memory_space<smem>>
    %16 = arith.subf %14, %15 : f32
    %17 = math.absf %16 : f32
    %cst_6 = arith.constant 0.000000e+00 : f32
    %18 = arith.addf %cst_6, %17 : f32
    %c0_7 = arith.constant 0 : index
    %c1 = arith.constant 1 : index
    %c0_8 = arith.constant 0 : index
    %c0_9 = arith.constant 0 : index
    %19 = vector.load %arg0[%c0_7, %c1, %c0_8, %c0_9] : memref<2x2x8x5xf32, #tpu.memory_space<vmem>>, vector<1x1x8x5xf32>
    %20 = vector.shape_cast %19 : vector<1x1x8x5xf32> to vector<8x5xf32>
    %21 = vector.extract_strided_slice %20 {offsets = [0, 0], sizes = [8, 4], strides = [1, 1]} : vector<8x5xf32> to vector<8x4xf32>
    %cst_10 = arith.constant dense<0xFF800000> : vector<8xf32>
    %22 = vector.multi_reduction <maximumf>, %21, %cst_10 [1] : vector<8x4xf32> to vector<8xf32>
    %23 = vector.shape_cast %22 : vector<8xf32> to vector<8x1xf32>
    %24 = vector.extract_strided_slice %20 {offsets = [0, 4], sizes = [8, 1], strides = [1, 1]} : vector<8x5xf32> to vector<8x1xf32>
    %25 = arith.cmpf oge, %23, %24 : vector<8x1xf32>
    %26 = arith.extui %25 : vector<8x1xi1> to vector<8x1xi32>
    %27 = arith.sitofp %26 : vector<8x1xi32> to vector<8x1xf32>
    %28 = vector.shape_cast %27 : vector<8x1xf32> to vector<1x8x1xf32>
    %cst_11 = arith.constant dense<0.000000e+00> : vector<1xf32>
    %29 = vector.multi_reduction <add>, %28, %cst_11 [1, 2] : vector<1x8x1xf32> to vector<1xf32>
    %30 = vector.shape_cast %29 : vector<1xf32> to vector<1x1x1xf32>
    %31 = vector.extract %30[0, 0, 0] : f32 from vector<1x1x1xf32>
    %c1_12 = arith.constant 1 : index
    %32 = memref.load %arg1[%c1_12] : memref<2xf32, #tpu.memory_space<smem>>
    %33 = arith.subf %31, %32 : f32
    %34 = math.absf %33 : f32
    %35 = arith.addf %18, %34 : f32
    %cst_13 = arith.constant 5.000000e-01 : f32
    %36 = arith.mulf %35, %cst_13 : f32
    %c0_14 = arith.constant 0 : index
    %c0_15 = arith.constant 0 : index
    %c0_16 = arith.constant 0 : index
    %37 = vector.load %arg2[%c0_14, %c0_15, %c0_16] : memref<2x8x128xf32, #tpu.memory_space<vmem>>, vector<1x8x128xf32>
    %38 = vector.shape_cast %37 : vector<1x8x128xf32> to vector<8x128xf32>
    %39 = vector.extract_strided_slice %38 {offsets = [0, 0], sizes = [4, 128], strides = [1, 1]} : vector<8x128xf32> to vector<4x128xf32>
    %40 = vector.extract_strided_slice %38 {offsets = [4, 0], sizes = [4, 128], strides = [1, 1]} : vector<8x128xf32> to vector<4x128xf32>
    %41 = arith.subf %39, %40 : vector<4x128xf32>
    %42 = math.absf %41 : vector<4x128xf32>
    %43 = vector.shape_cast %42 : vector<4x128xf32> to vector<1x4x128xf32>
    %cst_17 = arith.constant dense<0.000000e+00> : vector<1xf32>
    %44 = vector.multi_reduction <add>, %43, %cst_17 [1, 2] : vector<1x4x128xf32> to vector<1xf32>
    %45 = vector.shape_cast %44 : vector<1xf32> to vector<1x1x1xf32>
    %46 = vector.extract %45[0, 0, 0] : f32 from vector<1x1x1xf32>
    %47 = vector.extract_strided_slice %38 {offsets = [0, 0], sizes = [2, 128], strides = [1, 1]} : vector<8x128xf32> to vector<2x128xf32>
    %48 = vector.extract_strided_slice %38 {offsets = [2, 0], sizes = [2, 128], strides = [1, 1]} : vector<8x128xf32> to vector<2x128xf32>
    %cst_18 = arith.constant 5.000000e-01 : f32
    %49 = vector.broadcast %cst_18 : f32 to vector<2x128xf32>
    %50 = arith.mulf %49, %48 : vector<2x128xf32>
    %51 = arith.subf %47, %50 : vector<2x128xf32>
    %52 = vector.extract_strided_slice %38 {offsets = [0, 0], sizes = [2, 128], strides = [1, 1]} : vector<8x128xf32> to vector<2x128xf32>
    %53 = vector.extract_strided_slice %38 {offsets = [2, 0], sizes = [2, 128], strides = [1, 1]} : vector<8x128xf32> to vector<2x128xf32>
    %cst_19 = arith.constant 5.000000e-01 : f32
    %54 = vector.broadcast %cst_19 : f32 to vector<2x128xf32>
    %55 = arith.mulf %54, %53 : vector<2x128xf32>
    %56 = arith.addf %52, %55 : vector<2x128xf32>
    %57 = vector.extract_strided_slice %38 {offsets = [4, 0], sizes = [2, 128], strides = [1, 1]} : vector<8x128xf32> to vector<2x128xf32>
    %58 = vector.extract_strided_slice %38 {offsets = [6, 0], sizes = [2, 128], strides = [1, 1]} : vector<8x128xf32> to vector<2x128xf32>
    %cst_20 = arith.constant 5.000000e-01 : f32
    %59 = vector.broadcast %cst_20 : f32 to vector<2x128xf32>
    %60 = arith.mulf %59, %58 : vector<2x128xf32>
    %61 = arith.subf %57, %60 : vector<2x128xf32>
    %62 = vector.extract_strided_slice %38 {offsets = [4, 0], sizes = [2, 128], strides = [1, 1]} : vector<8x128xf32> to vector<2x128xf32>
    %63 = vector.extract_strided_slice %38 {offsets = [6, 0], sizes = [2, 128], strides = [1, 1]} : vector<8x128xf32> to vector<2x128xf32>
    %cst_21 = arith.constant 5.000000e-01 : f32
    %64 = vector.broadcast %cst_21 : f32 to vector<2x128xf32>
    %65 = arith.mulf %64, %63 : vector<2x128xf32>
    %66 = arith.addf %62, %65 : vector<2x128xf32>
    %67 = arith.subf %56, %51 : vector<2x128xf32>
    %68 = arith.subf %66, %61 : vector<2x128xf32>
    %69 = vector.extract_strided_slice %67 {offsets = [0, 0], sizes = [1, 128], strides = [1, 1]} : vector<2x128xf32> to vector<1x128xf32>
    %70 = vector.extract_strided_slice %67 {offsets = [1, 0], sizes = [1, 128], strides = [1, 1]} : vector<2x128xf32> to vector<1x128xf32>
    %71 = arith.mulf %69, %70 : vector<1x128xf32>
    %72 = vector.extract_strided_slice %68 {offsets = [0, 0], sizes = [1, 128], strides = [1, 1]} : vector<2x128xf32> to vector<1x128xf32>
    %73 = vector.extract_strided_slice %68 {offsets = [1, 0], sizes = [1, 128], strides = [1, 1]} : vector<2x128xf32> to vector<1x128xf32>
    %74 = arith.mulf %72, %73 : vector<1x128xf32>
    %75 = arith.minimumf %56, %66 : vector<2x128xf32>
    %76 = arith.maximumf %51, %61 : vector<2x128xf32>
    %77 = arith.subf %75, %76 : vector<2x128xf32>
    %cst_22 = arith.constant 0.000000e+00 : f32
    %78 = vector.broadcast %cst_22 : f32 to vector<2x128xf32>
    %79 = arith.maximumf %77, %78 : vector<2x128xf32>
    %80 = vector.extract_strided_slice %79 {offsets = [0, 0], sizes = [1, 128], strides = [1, 1]} : vector<2x128xf32> to vector<1x128xf32>
    %81 = vector.extract_strided_slice %79 {offsets = [1, 0], sizes = [1, 128], strides = [1, 1]} : vector<2x128xf32> to vector<1x128xf32>
    %82 = arith.mulf %80, %81 : vector<1x128xf32>
    %83 = arith.addf %71, %74 : vector<1x128xf32>
    %84 = arith.subf %83, %82 : vector<1x128xf32>
    %85 = arith.divf %82, %84 : vector<1x128xf32>
    %86 = arith.maximumf %56, %66 : vector<2x128xf32>
    %87 = arith.minimumf %51, %61 : vector<2x128xf32>
    %88 = arith.subf %86, %87 : vector<2x128xf32>
    %89 = vector.extract_strided_slice %88 {offsets = [0, 0], sizes = [1, 128], strides = [1, 1]} : vector<2x128xf32> to vector<1x128xf32>
    %90 = vector.extract_strided_slice %88 {offsets = [1, 0], sizes = [1, 128], strides = [1, 1]} : vector<2x128xf32> to vector<1x128xf32>
    %91 = arith.mulf %89, %90 : vector<1x128xf32>
    %92 = arith.subf %91, %84 : vector<1x128xf32>
    %93 = arith.divf %92, %91 : vector<1x128xf32>
    %94 = arith.subf %85, %93 : vector<1x128xf32>
    %cst_23 = arith.constant 1.000000e+00 : f32
    %95 = vector.broadcast %cst_23 : f32 to vector<1x128xf32>
    %96 = arith.subf %95, %94 : vector<1x128xf32>
    %97 = vector.shape_cast %96 : vector<1x128xf32> to vector<1x1x128xf32>
    %cst_24 = arith.constant dense<0.000000e+00> : vector<1xf32>
    %98 = vector.multi_reduction <add>, %97, %cst_24 [1, 2] : vector<1x1x128xf32> to vector<1xf32>
    %99 = vector.shape_cast %98 : vector<1xf32> to vector<1x1x1xf32>
    %100 = vector.extract %99[0, 0, 0] : f32 from vector<1x1x1xf32>
    %c0_i32 = arith.constant 0 : i32
    %101 = vector.broadcast %c0_i32 : i32 to vector<8x128xi32>
    %102 = arith.cmpi eq, %1, %101 : vector<8x128xi32>
    %c1_i32 = arith.constant 1 : i32
    %103 = vector.broadcast %c1_i32 : i32 to vector<8x128xi32>
    %104 = arith.cmpi eq, %1, %103 : vector<8x128xi32>
    %105 = arith.mulf %46, %0 : f32
    %c2_i32 = arith.constant 2 : i32
    %106 = vector.broadcast %c2_i32 : i32 to vector<8x128xi32>
    %107 = arith.cmpi eq, %1, %106 : vector<8x128xi32>
    %108 = arith.mulf %100, %0 : f32
    %cst_25 = arith.constant 0.000000e+00 : f32
    %109 = vector.broadcast %108 : f32 to vector<8x128xf32>
    %110 = vector.broadcast %cst_25 : f32 to vector<8x128xf32>
    %111 = arith.select %107, %109, %110 : vector<8x128xi1>, vector<8x128xf32>
    %112 = vector.broadcast %105 : f32 to vector<8x128xf32>
    %113 = arith.select %104, %112, %111 : vector<8x128xi1>, vector<8x128xf32>
    %114 = vector.broadcast %36 : f32 to vector<8x128xf32>
    %115 = arith.select %102, %114, %113 : vector<8x128xi1>, vector<8x128xf32>
    %c0_26 = arith.constant 0 : index
    %c0_27 = arith.constant 0 : index
    %c0_28 = arith.constant 0 : index
    %116 = vector.load %arg4[%c0_26, %c0_27, %c0_28] : memref<2x8x128xf32, #tpu.memory_space<vmem>>, vector<1x8x128xf32>
    %117 = vector.shape_cast %116 : vector<1x8x128xf32> to vector<8x128xf32>
    %118 = vector.shape_cast %115 : vector<8x128xf32> to vector<1x8x128xf32>
    tpu.vector_store %arg4[%c0_26, %c0_27, %c0_28], %118 {strides = array<i32>} : memref<2x8x128xf32, #tpu.memory_space<vmem>>, vector<1x8x128xf32>,
    %c1_29 = arith.constant 1 : index
    %c0_30 = arith.constant 0 : index
    %c0_31 = arith.constant 0 : index
    %c0_32 = arith.constant 0 : index
    %119 = vector.load %arg0[%c1_29, %c0_30, %c0_31, %c0_32] : memref<2x2x8x5xf32, #tpu.memory_space<vmem>>, vector<1x1x8x5xf32>
    %120 = vector.shape_cast %119 : vector<1x1x8x5xf32> to vector<8x5xf32>
    %121 = vector.extract_strided_slice %120 {offsets = [0, 0], sizes = [8, 4], strides = [1, 1]} : vector<8x5xf32> to vector<8x4xf32>
    %cst_33 = arith.constant dense<0xFF800000> : vector<8xf32>
    %122 = vector.multi_reduction <maximumf>, %121, %cst_33 [1] : vector<8x4xf32> to vector<8xf32>
    %123 = vector.shape_cast %122 : vector<8xf32> to vector<8x1xf32>
    %124 = vector.extract_strided_slice %120 {offsets = [0, 4], sizes = [8, 1], strides = [1, 1]} : vector<8x5xf32> to vector<8x1xf32>
    %125 = arith.cmpf oge, %123, %124 : vector<8x1xf32>
    %126 = arith.extui %125 : vector<8x1xi1> to vector<8x1xi32>
    %127 = arith.sitofp %126 : vector<8x1xi32> to vector<8x1xf32>
    %128 = vector.shape_cast %127 : vector<8x1xf32> to vector<1x8x1xf32>
    %cst_34 = arith.constant dense<0.000000e+00> : vector<1xf32>
    %129 = vector.multi_reduction <add>, %128, %cst_34 [1, 2] : vector<1x8x1xf32> to vector<1xf32>
    %130 = vector.shape_cast %129 : vector<1xf32> to vector<1x1x1xf32>
    %131 = vector.extract %130[0, 0, 0] : f32 from vector<1x1x1xf32>
    %c0_35 = arith.constant 0 : index
    %132 = memref.load %arg1[%c0_35] : memref<2xf32, #tpu.memory_space<smem>>
    %133 = arith.subf %131, %132 : f32
    %134 = math.absf %133 : f32
    %cst_36 = arith.constant 0.000000e+00 : f32
    %135 = arith.addf %cst_36, %134 : f32
    %c1_37 = arith.constant 1 : index
    %c1_38 = arith.constant 1 : index
    %c0_39 = arith.constant 0 : index
    %c0_40 = arith.constant 0 : index
    %136 = vector.load %arg0[%c1_37, %c1_38, %c0_39, %c0_40] : memref<2x2x8x5xf32, #tpu.memory_space<vmem>>, vector<1x1x8x5xf32>
    %137 = vector.shape_cast %136 : vector<1x1x8x5xf32> to vector<8x5xf32>
    %138 = vector.extract_strided_slice %137 {offsets = [0, 0], sizes = [8, 4], strides = [1, 1]} : vector<8x5xf32> to vector<8x4xf32>
    %cst_41 = arith.constant dense<0xFF800000> : vector<8xf32>
    %139 = vector.multi_reduction <maximumf>, %138, %cst_41 [1] : vector<8x4xf32> to vector<8xf32>
    %140 = vector.shape_cast %139 : vector<8xf32> to vector<8x1xf32>
    %141 = vector.extract_strided_slice %137 {offsets = [0, 4], sizes = [8, 1], strides = [1, 1]} : vector<8x5xf32> to vector<8x1xf32>
    %142 = arith.cmpf oge, %140, %141 : vector<8x1xf32>
    %143 = arith.extui %142 : vector<8x1xi1> to vector<8x1xi32>
    %144 = arith.sitofp %143 : vector<8x1xi32> to vector<8x1xf32>
    %145 = vector.shape_cast %144 : vector<8x1xf32> to vector<1x8x1xf32>
    %cst_42 = arith.constant dense<0.000000e+00> : vector<1xf32>
    %146 = vector.multi_reduction <add>, %145, %cst_42 [1, 2] : vector<1x8x1xf32> to vector<1xf32>
    %147 = vector.shape_cast %146 : vector<1xf32> to vector<1x1x1xf32>
    %148 = vector.extract %147[0, 0, 0] : f32 from vector<1x1x1xf32>
    %c1_43 = arith.constant 1 : index
    %149 = memref.load %arg1[%c1_43] : memref<2xf32, #tpu.memory_space<smem>>
    %150 = arith.subf %148, %149 : f32
    %151 = math.absf %150 : f32
    %152 = arith.addf %135, %151 : f32
    %cst_44 = arith.constant 5.000000e-01 : f32
    %153 = arith.mulf %152, %cst_44 : f32
    %c1_45 = arith.constant 1 : index
    %c0_46 = arith.constant 0 : index
    %c0_47 = arith.constant 0 : index
    %154 = vector.load %arg2[%c1_45, %c0_46, %c0_47] : memref<2x8x128xf32, #tpu.memory_space<vmem>>, vector<1x8x128xf32>
    %155 = vector.shape_cast %154 : vector<1x8x128xf32> to vector<8x128xf32>
    %156 = vector.extract_strided_slice %155 {offsets = [0, 0], sizes = [4, 128], strides = [1, 1]} : vector<8x128xf32> to vector<4x128xf32>
    %157 = vector.extract_strided_slice %155 {offsets = [4, 0], sizes = [4, 128], strides = [1, 1]} : vector<8x128xf32> to vector<4x128xf32>
    %158 = arith.subf %156, %157 : vector<4x128xf32>
    %159 = math.absf %158 : vector<4x128xf32>
    %160 = vector.shape_cast %159 : vector<4x128xf32> to vector<1x4x128xf32>
    %cst_48 = arith.constant dense<0.000000e+00> : vector<1xf32>
    %161 = vector.multi_reduction <add>, %160, %cst_48 [1, 2] : vector<1x4x128xf32> to vector<1xf32>
    %162 = vector.shape_cast %161 : vector<1xf32> to vector<1x1x1xf32>
    %163 = vector.extract %162[0, 0, 0] : f32 from vector<1x1x1xf32>
    %164 = vector.extract_strided_slice %155 {offsets = [0, 0], sizes = [2, 128], strides = [1, 1]} : vector<8x128xf32> to vector<2x128xf32>
    %165 = vector.extract_strided_slice %155 {offsets = [2, 0], sizes = [2, 128], strides = [1, 1]} : vector<8x128xf32> to vector<2x128xf32>
    %cst_49 = arith.constant 5.000000e-01 : f32
    %166 = vector.broadcast %cst_49 : f32 to vector<2x128xf32>
    %167 = arith.mulf %166, %165 : vector<2x128xf32>
    %168 = arith.subf %164, %167 : vector<2x128xf32>
    %169 = vector.extract_strided_slice %155 {offsets = [0, 0], sizes = [2, 128], strides = [1, 1]} : vector<8x128xf32> to vector<2x128xf32>
    %170 = vector.extract_strided_slice %155 {offsets = [2, 0], sizes = [2, 128], strides = [1, 1]} : vector<8x128xf32> to vector<2x128xf32>
    %cst_50 = arith.constant 5.000000e-01 : f32
    %171 = vector.broadcast %cst_50 : f32 to vector<2x128xf32>
    %172 = arith.mulf %171, %170 : vector<2x128xf32>
    %173 = arith.addf %169, %172 : vector<2x128xf32>
    %174 = vector.extract_strided_slice %155 {offsets = [4, 0], sizes = [2, 128], strides = [1, 1]} : vector<8x128xf32> to vector<2x128xf32>
    %175 = vector.extract_strided_slice %155 {offsets = [6, 0], sizes = [2, 128], strides = [1, 1]} : vector<8x128xf32> to vector<2x128xf32>
    %cst_51 = arith.constant 5.000000e-01 : f32
    %176 = vector.broadcast %cst_51 : f32 to vector<2x128xf32>
    %177 = arith.mulf %176, %175 : vector<2x128xf32>
    %178 = arith.subf %174, %177 : vector<2x128xf32>
    %179 = vector.extract_strided_slice %155 {offsets = [4, 0], sizes = [2, 128], strides = [1, 1]} : vector<8x128xf32> to vector<2x128xf32>
    %180 = vector.extract_strided_slice %155 {offsets = [6, 0], sizes = [2, 128], strides = [1, 1]} : vector<8x128xf32> to vector<2x128xf32>
    %cst_52 = arith.constant 5.000000e-01 : f32
    %181 = vector.broadcast %cst_52 : f32 to vector<2x128xf32>
    %182 = arith.mulf %181, %180 : vector<2x128xf32>
    %183 = arith.addf %179, %182 : vector<2x128xf32>
    %184 = arith.subf %173, %168 : vector<2x128xf32>
    %185 = arith.subf %183, %178 : vector<2x128xf32>
    %186 = vector.extract_strided_slice %184 {offsets = [0, 0], sizes = [1, 128], strides = [1, 1]} : vector<2x128xf32> to vector<1x128xf32>
    %187 = vector.extract_strided_slice %184 {offsets = [1, 0], sizes = [1, 128], strides = [1, 1]} : vector<2x128xf32> to vector<1x128xf32>
    %188 = arith.mulf %186, %187 : vector<1x128xf32>
    %189 = vector.extract_strided_slice %185 {offsets = [0, 0], sizes = [1, 128], strides = [1, 1]} : vector<2x128xf32> to vector<1x128xf32>
    %190 = vector.extract_strided_slice %185 {offsets = [1, 0], sizes = [1, 128], strides = [1, 1]} : vector<2x128xf32> to vector<1x128xf32>
    %191 = arith.mulf %189, %190 : vector<1x128xf32>
    %192 = arith.minimumf %173, %183 : vector<2x128xf32>
    %193 = arith.maximumf %168, %178 : vector<2x128xf32>
    %194 = arith.subf %192, %193 : vector<2x128xf32>
    %cst_53 = arith.constant 0.000000e+00 : f32
    %195 = vector.broadcast %cst_53 : f32 to vector<2x128xf32>
    %196 = arith.maximumf %194, %195 : vector<2x128xf32>
    %197 = vector.extract_strided_slice %196 {offsets = [0, 0], sizes = [1, 128], strides = [1, 1]} : vector<2x128xf32> to vector<1x128xf32>
    %198 = vector.extract_strided_slice %196 {offsets = [1, 0], sizes = [1, 128], strides = [1, 1]} : vector<2x128xf32> to vector<1x128xf32>
    %199 = arith.mulf %197, %198 : vector<1x128xf32>
    %200 = arith.addf %188, %191 : vector<1x128xf32>
    %201 = arith.subf %200, %199 : vector<1x128xf32>
    %202 = arith.divf %199, %201 : vector<1x128xf32>
    %203 = arith.maximumf %173, %183 : vector<2x128xf32>
    %204 = arith.minimumf %168, %178 : vector<2x128xf32>
    %205 = arith.subf %203, %204 : vector<2x128xf32>
    %206 = vector.extract_strided_slice %205 {offsets = [0, 0], sizes = [1, 128], strides = [1, 1]} : vector<2x128xf32> to vector<1x128xf32>
    %207 = vector.extract_strided_slice %205 {offsets = [1, 0], sizes = [1, 128], strides = [1, 1]} : vector<2x128xf32> to vector<1x128xf32>
    %208 = arith.mulf %206, %207 : vector<1x128xf32>
    %209 = arith.subf %208, %201 : vector<1x128xf32>
    %210 = arith.divf %209, %208 : vector<1x128xf32>
    %211 = arith.subf %202, %210 : vector<1x128xf32>
    %cst_54 = arith.constant 1.000000e+00 : f32
    %212 = vector.broadcast %cst_54 : f32 to vector<1x128xf32>
    %213 = arith.subf %212, %211 : vector<1x128xf32>
    %214 = vector.shape_cast %213 : vector<1x128xf32> to vector<1x1x128xf32>
    %cst_55 = arith.constant dense<0.000000e+00> : vector<1xf32>
    %215 = vector.multi_reduction <add>, %214, %cst_55 [1, 2] : vector<1x1x128xf32> to vector<1xf32>
    %216 = vector.shape_cast %215 : vector<1xf32> to vector<1x1x1xf32>
    %217 = vector.extract %216[0, 0, 0] : f32 from vector<1x1x1xf32>
    %c0_i32_56 = arith.constant 0 : i32
    %218 = vector.broadcast %c0_i32_56 : i32 to vector<8x128xi32>
    %219 = arith.cmpi eq, %1, %218 : vector<8x128xi32>
    %c1_i32_57 = arith.constant 1 : i32
    %220 = vector.broadcast %c1_i32_57 : i32 to vector<8x128xi32>
    %221 = arith.cmpi eq, %1, %220 : vector<8x128xi32>
    %222 = arith.mulf %163, %0 : f32
    %c2_i32_58 = arith.constant 2 : i32
    %223 = vector.broadcast %c2_i32_58 : i32 to vector<8x128xi32>
    %224 = arith.cmpi eq, %1, %223 : vector<8x128xi32>
    %225 = arith.mulf %217, %0 : f32
    %cst_59 = arith.constant 0.000000e+00 : f32
    %226 = vector.broadcast %225 : f32 to vector<8x128xf32>
    %227 = vector.broadcast %cst_59 : f32 to vector<8x128xf32>
    %228 = arith.select %224, %226, %227 : vector<8x128xi1>, vector<8x128xf32>
    %229 = vector.broadcast %222 : f32 to vector<8x128xf32>
    %230 = arith.select %221, %229, %228 : vector<8x128xi1>, vector<8x128xf32>
    %231 = vector.broadcast %153 : f32 to vector<8x128xf32>
    %232 = arith.select %219, %231, %230 : vector<8x128xi1>, vector<8x128xf32>
    %c1_60 = arith.constant 1 : index
    %c0_61 = arith.constant 0 : index
    %c0_62 = arith.constant 0 : index
    %233 = vector.load %arg4[%c1_60, %c0_61, %c0_62] : memref<2x8x128xf32, #tpu.memory_space<vmem>>, vector<1x8x128xf32>
    %234 = vector.shape_cast %233 : vector<1x8x128xf32> to vector<8x128xf32>
    %235 = vector.shape_cast %232 : vector<8x128xf32> to vector<1x8x128xf32>
    tpu.vector_store %arg4[%c1_60, %c0_61, %c0_62], %235 {strides = array<i32>} : memref<2x8x128xf32, #tpu.memory_space<vmem>>, vector<1x8x128xf32>,
    return
  }
}

</mosaic_0001>

<bundles_post_ra>
// kernel: tpu_custom_call.1
= control target key start
LH: loop header
LB: loop body
LE: loop exit
PB: predicated region body
PF: predicated region fallthrough
CT: control target
= control target key end

     0   :  { %10 = vsyncpa [#allocation5], 0  ;;  %s502_s0 = inlined_call_operand.vmem [shape: f32[2,2,8,5], index: 0, kind: input, shape index: {}]   ;;  %s503_s1 = inlined_call_operand.vmem [shape: f32[2], index: 1, kind: input, shape index: {}]   ;;  %s504_s2 = inlined_call_operand.vmem [shape: f32[2,8,128], index: 2, kind: input, shape index: {}]   ;;  %s505_s3 = inlined_call_operand.<no memory space> [shape: f32[1], index: 3, kind: input, shape index: {}]   ;;  %s506_s4 = inlined_call_operand.hbm [shape: f32[2,8,128], index: 4, kind: output, shape index: {}]  }
   0x1   :  { %11 = vsyncpa [#allocation4], 0  ;;  %s20_s17 = sshll.u32 %s503_s1, 4  ;;  %s21_s17 = int_to_ptr.vmem [resolvable:$true] %s20_s17 }
   0x2   :  { %s374_s18 = scalar_lea.vmem %s21_s17, 16  ;;  %p379_p1 = scmp.lt.s32.totalorder %s21_s17, %s21_s17 }
   0x3   :  { %p375_p0 = scmp.ne.s32.totalorder %s21_s17, %s374_s18  ;;  %p380_p2 = scmp.lt.s32.totalorder %s374_s18, %s374_s18 }
   0x5   :  { %p381_p3 = por %p380_p2, %p379_p1 }
   0x7   :  { %p382_p4 = pnand %p381_p3, %p375_p0 }
   0x9   :  { %385 = shalt.err (!%p382_p4)
}
   0xa   :  { %s412_s19 = smov [#allocation3]  }
   0xb   :  { %23 = dma.vmem_to_smem %s21_s17, 16, %s412_s19, [#allocation5]  }
   0xc   :  { %408 = dma.done.wait [#allocation5], 16  }
   0xd   :  { %409 = vsyncadd [#allocation5], 4294967280 }
   0xe   :  { %31 = sfence }
   0xf   :  { %vm36_vm0 = vcmask 31744   ;;  %v328_v0 = vld [vmem:[%s502_s0 + $0x10] sm:$0xff]  ;;  %v35_v1 = vld [vmem:[%s502_s0] sm:$0xff]  ;;  %v330_v2 = vld [vmem:[%s502_s0 + $0x18] sm:$0xff]  ;;  %v413_v26 = vmov 0.0   ;;  %vm95_vm5 = vcmask 1043456  }
  0x10   :  { %v175_v3 = vsel %vm36_vm0, %v328_v0, -inf  ;;  %v37_v4 = vsel %vm36_vm0, %v35_v1, -inf  ;;  %v325_v5 = vld [vmem:[%s502_s0 + $0x8] sm:$0xff]  ;;  %v201_v6 = vsel %vm36_vm0, %v330_v2, -inf  ;;  %v89_v8 = vld [vmem:[%s504_s2] sm:$0xff]  ;;  %s414_s0 = smov 124  }
  0x11   :  { %176 = vmax.xlane.f32.xlu1 %v175_v3  ;;  %38 = vmax.xlane.f32.xlu0 %v37_v4  ;;  %v64_v7 = vsel %vm36_vm0, %v325_v5, -inf  ;;  %v106_v9 = vmul.f32 0.5, %v89_v8  ;;  %v91_v43 = vrot.slane %v89_v8, 4  ;;  %vm150_vm6 = vcmask 1040384   ;;  %v333_v55 = vld [vmem:[%s504_s2 + $0x8] sm:$0xff]  ;;  %s58_s2 = sld [smem:[#allocation3]] }
  0x12   :  { %v243_v56 = vmul.f32 0.5, %v333_v55  ;;  %vm47_vm7 = vcmask 7168   ;;  %s468_s5 = sld [smem:[#allocation3 + $0x1]] }
  0x13   :  { %v108_v10 = vrot.slane %v106_v9, 2  ;;  %v93_v47 = vsub.f32 %v89_v8, %v91_v43 }
  0x14   :  { %v245_v57 = vrot.slane %v243_v56, 2 }
  0x15   :  { %202 = vmax.xlane.f32.xlu1 %v201_v6  ;;  %65 = vmax.xlane.f32.xlu0 %v64_v7  ;;  %v110_v11 = vsub.f32 %v89_v8, %v108_v10  ;;  %v111_v12 = vadd.f32 %v108_v10, %v89_v8  ;;  %v94_v50 = vand.u32 2147483647, %v93_v47 }
  0x16   :  { %v247_v58 = vsub.f32 %v333_v55, %v245_v57  ;;  %v248_v59 = vadd.f32 %v333_v55, %v245_v57 }
  0x17   :  { %v118_v13 = vrot.slane %v111_v12, 4  ;;  %v122_v14 = vrot.slane %v110_v11, 4  ;;  %v112_v15 = vsub.f32 %v111_v12, %v110_v11  ;;  %v96_v52 = vsel %vm95_vm5, %v94_v50, 0.0 }
  0x18   :  { %v255_v60 = vrot.slane %v248_v59, 4  ;;  %v259_v61 = vrot.slane %v247_v58, 4  ;;  %v249_v62 = vsub.f32 %v248_v59, %v247_v58 }
  0x19   :  { %v120_v16 = vmin.f32 %v111_v12, %v118_v13  ;;  %v124_v17 = vmax.f32 %v110_v11, %v122_v14  ;;  %v114_v18 = vrot.slane %v112_v15, 1  ;;  %v138_v22 = vmax.f32 %v111_v12, %v118_v13 }
  0x1a   :  { %v139_v23 = vmin.f32 %v110_v11, %v122_v14  ;;  %v257_v63 = vmin.f32 %v248_v59, %v255_v60  ;;  %v276_v6 = vmin.f32 %v247_v58, %v259_v61 }
  0x1b   :  { %v125_v19 = vsub.f32 %v120_v16, %v124_v17  ;;  %v116_v24 = vmul.f32 %v114_v18, %v112_v15  ;;  %v229_v18 = vrot.slane %v333_v55, 4 }
  0x1c   :  { %v140_v30 = vsub.f32 %v138_v22, %v139_v23 }
  0x1d   :  { %v126_v25 = vmax.f32 %v125_v19, 0.0  ;;  %v132_v32 = vrot.slane %v116_v24, 4 }
  0x1e   :  { %v142_v38 = vrot.slane %v140_v30, 1 }
  0x1f   :  { %v128_v31 = vrot.slane %v126_v25, 1  ;;  %v134_v40 = vadd.f32 %v132_v32, %v116_v24 }
  0x20   :  { %v144_v41 = vmul.f32 %v142_v38, %v140_v30 }
  0x21   :  { %v130_v39 = vmul.f32 %v128_v31, %v126_v25  ;;  %v231_v25 = vsub.f32 %v333_v55, %v229_v18 }
  0x22   :  { %366 = vrcp.f32 %v144_v41 }
  0x23   :  { %v135_v42 = vsub.f32 %v134_v40, %v130_v39  ;;  %v232_v31 = vand.u32 2147483647, %v231_v25 }
  0x25   :  { %368 = vrcp.f32 %v135_v42  ;;  %v145_v45 = vsub.f32 %v144_v41, %v135_v42 }
  0x2c   :  { %v367_v44 = vpop.eup %366 }
  0x2d   :  { %v147_v49 = vmul.f32 %v367_v44, %v145_v45 }
  0x2f   :  { %v369_v46 = vpop.eup %368 }
  0x30   :  { %v137_v48 = vmul.f32 %v369_v46, %v130_v39 }
  0x32   :  { %v148_v51 = vsub.f32 %v137_v48, %v147_v49 }
  0x34   :  { %v149_v53 = vsub.f32 1.0, %v148_v51 }
  0x36   :  { %v151_v54 = vsel %vm150_vm6, %v149_v53, 0.0 }
  0x9e   :  { %v177_v20 = vpop.xlane.xlu1 %176  ;;  %v39_v21 = vpop.xlane.xlu0 %38 }
  0x9f   :  { %vm178_vm1 = vcmp.ge.f32.partialorder %v177_v20, %v328_v0  ;;  %vm40_vm2 = vcmp.ge.f32.partialorder %v39_v21, %v35_v1  ;;  %v261_v0 = vmax.f32 %v247_v58, %v259_v61  ;;  %v251_v1 = vrot.slane %v249_v62, 1 }
  0xa0   :  { %v329_v27 = vsel %vm178_vm1, 1.0, %v413_v26  ;;  %v324_v33 = vsel %vm40_vm2, 1.0, %v413_v26 }
  0xa1   :  { %v253_v3 = vmul.f32 %v251_v1, %v249_v62 }
  0xa2   :  { %v203_v28 = vpop.xlane.xlu1 %202  ;;  %v66_v29 = vpop.xlane.xlu0 %65 }
  0xa3   :  { %vm204_vm3 = vcmp.ge.f32.partialorder %v203_v28, %v330_v2  ;;  %vm67_vm4 = vcmp.ge.f32.partialorder %v66_v29, %v325_v5  ;;  %v262_v2 = vsub.f32 %v257_v63, %v261_v0  ;;  %v275_v5 = vmax.f32 %v248_v59, %v255_v60 }
  0xa4   :  { %v331_v34 = vsel %vm204_vm3, 1.0, %v413_v26  ;;  %v326_v35 = vsel %vm67_vm4, 1.0, %v413_v26  ;;  %v269_v8 = vrot.slane %v253_v3, 4 }
  0xa5   :  { %v361_v36 = vpack.i.bf16 %v331_v34, %v329_v27  ;;  %v356_v37 = vpack.i.bf16 %v326_v35, %v324_v33  ;;  %v263_v4 = vmax.f32 %v262_v2, 0.0  ;;  %v277_v9 = vsub.f32 %v275_v5, %v276_v6 }
  0xa6   :  { %v271_v11 = vadd.f32 %v269_v8, %v253_v3  ;;  %v233_v35 = vsel %vm95_vm5, %v232_v31, 0.0 }
  0xa7   :  { %362 = vrot.lane.b32.xlu1 %v361_v36, %s414_s0  ;;  %357 = vrot.lane.b32.xlu0 %v356_v37, %s414_s0  ;;  %v265_v7 = vrot.slane %v263_v4, 1  ;;  %v279_v12 = vrot.slane %v277_v9, 1 }
  0xa9   :  { %v267_v10 = vmul.f32 %v265_v7, %v263_v4  ;;  %v281_v14 = vmul.f32 %v279_v12, %v277_v9 }
  0xab   :  { %v272_v13 = vsub.f32 %v271_v11, %v267_v10 }
  0xad   :  { %370 = vrcp.f32 %v272_v13  ;;  %v282_v16 = vsub.f32 %v281_v14, %v272_v13 }
  0xae   :  { %372 = vrcp.f32 %v281_v14 }
  0xb7   :  { %v371_v15 = vpop.eup %370 }
  0xb8   :  { %v373_v17 = vpop.eup %372  ;;  %v274_v19 = vmul.f32 %v371_v15, %v267_v10 }
  0xb9   :  { %v284_v20 = vmul.f32 %v373_v17, %v282_v16 }
  0xbb   :  { %v285_v26 = vsub.f32 %v274_v19, %v284_v20 }
  0xbd   :  { %v286_v32 = vsub.f32 1.0, %v285_v26 }
  0xbf   :  { %v287_v36 = vsel %vm150_vm6, %v286_v32, 0.0 }
  0xc6   :  { %97 = vadd.xlane.f32.xlu0 %v96_v52 }
  0xcb   :  { %152 = vadd.xlane.f32.xlu1 %v151_v54 }
 0x119   :  { %v363_v21 = vpop.permute.xlu1 %362  ;;  %v358_v22 = vpop.permute.xlu0 %357 }
 0x11a   :  { %v360_v23 = vunpack.i.h.bf16 %v358_v22  ;;  %v359_v24 = vunpack.i.l.bf16 %v358_v22  ;;  %v365_v27 = vunpack.i.h.bf16 %v363_v21  ;;  %v364_v28 = vunpack.i.l.bf16 %v363_v21 }
 0x11c   :  { %v74_v29 = vsel %vm47_vm7, %v360_v23, 0.0  ;;  %v48_v30 = vsel %vm47_vm7, %v359_v24, 0.0  ;;  %v185_v33 = vsel %vm47_vm7, %v364_v28, 0.0  ;;  %v211_v34 = vsel %vm47_vm7, %v365_v27, 0.0 }
 0x11d   :  { %75 = vadd.xlane.f32.xlu0 %v74_v29  ;;  %49 = vadd.xlane.f32.xlu1 %v48_v30  ;;  %v33_v29 = vlaneseq }
 0x11f   :  { %v34_v30 = vshrl.u32 %v33_v29, 7 }
 0x121   :  { %186 = vadd.xlane.f32.xlu0 %v185_v33  ;;  %212 = vadd.xlane.f32.xlu1 %v211_v34  ;;  %vm164_vm8 = vcmp.eq.s32.totalorder %v34_v30, 2  ;;  %vm162_vm9 = vcmp.eq.s32.totalorder %v34_v30, 1  ;;  %vm161_vm10 = vcmp.eq.s32.totalorder %v34_v30, 0 }
 0x125   :  { %234 = vadd.xlane.f32.xlu0 %v233_v35  ;;  %288 = vadd.xlane.f32.xlu1 %v287_v36 }
 0x153   :  { %v98_v38 = vpop.xlane.xlu0 %97 }
 0x154   :  { %v99_v40 = vrot.slane %v98_v38, 4 }
 0x156   :  { %v100_v42 = vadd.f32 %v99_v40, %v98_v38 }
 0x158   :  { %v153_v37 = vpop.xlane.xlu1 %152  ;;  %v101_v48 = vrot.slane %v100_v42, 2 }
 0x159   :  { %v154_v39 = vrot.slane %v153_v37, 4 }
 0x15a   :  { %v102_v57 = vadd.f32 %v101_v48, %v100_v42 }
 0x15b   :  { %v155_v41 = vadd.f32 %v154_v39, %v153_v37 }
 0x15c   :  { %v103_v7 = vrot.slane %v102_v57, 1 }
 0x15d   :  { %v156_v47 = vrot.slane %v155_v41, 2 }
 0x15e   :  { %v104_v19 = vadd.f32 %v103_v7, %v102_v57 }
 0x15f   :  { %v157_v58 = vadd.f32 %v156_v47, %v155_v41 }
 0x161   :  { %v158_v8 = vrot.slane %v157_v58, 1 }
 0x163   :  { %v159_v20 = vadd.f32 %v158_v8, %v157_v58 }
 0x1aa   :  { %v76_v43 = vpop.xlane.xlu0 %75  ;;  %v50_v44 = vpop.xlane.xlu1 %49 }
 0x1ab   :  { %v77_v45 = vrot.slane %v76_v43, 4  ;;  %v51_v46 = vrot.slane %v50_v44, 4 }
 0x1ad   :  { %v78_v49 = vadd.f32 %v77_v45, %v76_v43  ;;  %v52_v50 = vadd.f32 %v51_v46, %v50_v44 }
 0x1ae   :  { %v187_v51 = vpop.xlane.xlu0 %186  ;;  %v213_v52 = vpop.xlane.xlu1 %212 }
 0x1af   :  { %v79_v53 = vrot.slane %v78_v49, 2  ;;  %v53_v54 = vrot.slane %v52_v50, 2  ;;  %v188_v55 = vrot.slane %v187_v51, 4  ;;  %v214_v56 = vrot.slane %v213_v52, 4 }
 0x1b1   :  { %v189_v59 = vadd.f32 %v188_v55, %v187_v51  ;;  %v215_v60 = vadd.f32 %v214_v56, %v213_v52  ;;  %v54_v61 = vadd.f32 %v53_v54, %v52_v50  ;;  %v80_v62 = vadd.f32 %v79_v53, %v78_v49 }
 0x1b2   :  { %v235_v63 = vpop.xlane.xlu0 %234  ;;  %v289_v0 = vpop.xlane.xlu1 %288 }
 0x1b3   :  { %v190_v1 = vrot.slane %v189_v59, 2  ;;  %v216_v2 = vrot.slane %v215_v60, 2  ;;  %v236_v3 = vrot.slane %v235_v63, 4  ;;  %v290_v4 = vrot.slane %v289_v0, 4 }
 0x1b4   :  { %v55_v5 = vrot.slane %v54_v61, 1  ;;  %v81_v6 = vrot.slane %v80_v62, 1 }
 0x1b5   :  { %v237_v9 = vadd.f32 %v236_v3, %v235_v63  ;;  %v291_v10 = vadd.f32 %v290_v4, %v289_v0  ;;  %v191_v11 = vadd.f32 %v190_v1, %v189_v59  ;;  %v217_v12 = vadd.f32 %v216_v2, %v215_v60 }
 0x1b6   :  { %v56_v13 = vadd.f32 %v55_v5, %v54_v61  ;;  %v82_v14 = vadd.f32 %v81_v6, %v80_v62 }
 0x1b7   :  { %v238_v15 = vrot.slane %v237_v9, 2  ;;  %v292_v16 = vrot.slane %v291_v10, 2  ;;  %v192_v17 = vrot.slane %v191_v11, 1  ;;  %v218_v18 = vrot.slane %v217_v12, 1 }
 0x1b8   :  { %334 = vpush %v56_v13 }
 0x1b9   :  { %v239_v21 = vadd.f32 %v238_v15, %v237_v9  ;;  %v293_v22 = vadd.f32 %v292_v16, %v291_v10  ;;  %336 = vpush %v82_v14  ;;  %v193_v23 = vadd.f32 %v192_v17, %v191_v11  ;;  %v219_v24 = vadd.f32 %v218_v18, %v217_v12 }
 0x1ba   :  { %338 = vpush %v104_v19 }
 0x1bb   :  { %340 = vpush %v159_v20  ;;  %v240_v25 = vrot.slane %v239_v21, 1  ;;  %v294_v26 = vrot.slane %v293_v22, 1 }
 0x1bc   :  { %342 = vpush %v193_v23 }
 0x1bd   :  { %344 = vpush %v219_v24  ;;  %v241_v27 = vadd.f32 %v240_v25, %v239_v21  ;;  %v295_v28 = vadd.f32 %v294_v26, %v293_v22 }
 0x1bf   :  { %346 = vpush %v241_v27 }
 0x1c0   :  { %348 = vpush %v295_v28 }
 0x1e9   :  { %s335_s6 = spop %334 }
 0x1ea   :  { %s59_s7 = ssub.f32 %s335_s6, %s58_s2  ;;  %s337_s8 = spop %336 }
 0x1eb   :  { %s85_s9 = ssub.f32 %s337_s8, %s468_s5  ;;  %s339_s10 = spop %338 }
 0x1ec   :  { %s60_s11 = sand.u32 2147483647, %s59_s7  ;;  %s163_s14 = smul.f32 %s339_s10, %s505_s3 }
 0x1ed   :  { %s86_s15 = sand.u32 2147483647, %s85_s9  ;;  %s341_s16 = spop %340 }
 0x1ee   :  { %s87_s17 = sadd.f32 %s86_s15, %s60_s11  ;;  %s165_s20 = smul.f32 %s341_s16, %s505_s3  ;;  %v168_v31 = vstv %s163_s14 }
 0x1ef   :  { %s343_s21 = spop %342  ;;  %s415_s9 = smov [#allocation6]  }
 0x1f0   :  { %s88_s22 = smul.f32 0.5, %s87_s17  ;;  %v166_v32 = vstv %s165_s20  ;;  %s196_s1 = ssub.f32 %s343_s21, %s58_s2 }
 0x1f1   :  { %v167_v33 = vsel %vm164_vm8, %v166_v32, 0.0  ;;  %s345_s23 = spop %344  ;;  %s312_s10 = sshll.u32 %s415_s9, 4  ;;  %s313_s10 = int_to_ptr.vmem [resolvable:$true] %s312_s10 }
 0x1f2   :  { %v170_v34 = vstv %s88_s22  ;;  %v169_v35 = vsel %vm162_vm9, %v168_v31, %v167_v33  ;;  %s197_s24 = sand.u32 2147483647, %s196_s1  ;;  %s222_s25 = ssub.f32 %s345_s23, %s468_s5 }
 0x1f3   :  { %s347_s26 = spop %346  ;;  %v171_v36 = vsel %vm161_vm10, %v170_v34, %v169_v35  ;;  %s386_s5 = scalar_lea.vmem %s313_s10, 256 }
 0x1f4   :  { %s223_s27 = sand.u32 2147483647, %s222_s25  ;;  %s297_s29 = smul.f32 %s347_s26, %s505_s3  ;;  %172 = vst [vmem:[#allocation6] sm:$0xff] %v171_v36 }
 0x1f5   :  { %s224_s30 = sadd.f32 %s223_s27, %s197_s24  ;;  %s349_s2 = spop %348 }
 0x1f6   :  { %s298_s8 = smul.f32 %s349_s2, %s505_s3  ;;  %v301_v37 = vstv %s297_s29  ;;  %p387_p5 = scmp.ne.s32.totalorder %s313_s10, %s386_s5 }
 0x1f7   :  { %s225_s11 = smul.f32 0.5, %s224_s30  ;;  %p391_p6 = scmp.lt.s32.totalorder %s313_s10, %s313_s10 }
 0x1f8   :  { %v299_v38 = vstv %s298_s8  ;;  %p392_p7 = scmp.lt.s32.totalorder %s386_s5, %s386_s5 }
 0x1f9   :  { %v303_v39 = vstv %s225_s11  ;;  %v300_v40 = vsel %vm164_vm8, %v299_v38, 0.0 }
 0x1fa   :  { %v302_v41 = vsel %vm162_vm9, %v301_v37, %v300_v40  ;;  %p393_p8 = por %p392_p7, %p391_p6 }
 0x1fb   :  { %v304_v42 = vsel %vm161_vm10, %v303_v39, %v302_v41 }
 0x1fc   :  { %306 = vst [vmem:[#allocation6 + $0x8] sm:$0xff] %v304_v42  ;;  %p394_p9 = pnand %p393_p8, %p387_p5 }
 0x1fe   :  { %397 = shalt.err (!%p394_p9)
}
 0x1ff   :  { %s398_s13 = scalar_lea.hbm %s506_s4, 256 }
 0x200   :  { %p399_p10 = scmp.ne.s32.totalorder %s506_s4, %s398_s13  ;;  %p402_p11 = scmp.lt.u32.totalorder %s398_s13, %s506_s4 }
 0x202   :  { %p404_p12 = pnand %p402_p11, %p399_p10 }
 0x204   :  { %407 = shalt.err (!%p404_p12)
}
 0x205   :  { %s416_s18 = smov 128   ;;  %s417_s19 = smov 8  }
 0x206   :  { %318 = dma.vmem_to_hbm [thread:$0]  %s313_s10, 256, %s506_s4, [#allocation4], %s416_s18, %s416_s18, %s417_s19  }
 0x207   :  { %410 = dma.done.wait [#allocation4], 256  }
 0x208   :  { %411 = vsyncadd [#allocation4], 4294967040 }
 0x209   :  { %322 = vsyncpa [#allocation4], 1 }
 0x20a   :  { %323 = vsyncpa [#allocation5], 1 }

</bundles_post_ra>
